<compile_context>
chip_gen: v7x
topology: tpu7x:2x2x1
jax: 0.10.0
libtpu: 0.0.40
codegen_flags: <defaults>
</compile_context>

<pallas_src>
import functools

import numpy as np
import jax
import jax.numpy as jnp
from jax import lax
from jax.experimental import pallas as pl
from jax.experimental.pallas import tpu as pltpu


# ----------------------------------------------------------------------------
# Host-side reference index matrix (used only by the pure-JAX reference)
# ----------------------------------------------------------------------------
def _update_index_matrix(batch_size: int, linear: bool = True) -> np.ndarray:
    n = 2 * batch_size
    idx = np.zeros((n, n), dtype=np.float32)
    if linear:
        for i in range(batch_size):
            s1, s2 = i, (i + 1) % batch_size
            t1, t2 = s1 + batch_size, s2 + batch_size
            idx[s1, s2] = 1.0 / float(batch_size)
            idx[t1, t2] = 1.0 / float(batch_size)
            idx[s1, t2] = -1.0 / float(batch_size)
            idx[s2, t1] = -1.0 / float(batch_size)
    else:
        for i in range(batch_size):
            for j in range(batch_size):
                if i != j:
                    idx[i, j] = 1.0 / float(batch_size * (batch_size - 1))
                    idx[i + batch_size, j + batch_size] = 1.0 / float(
                        batch_size * (batch_size - 1))
        for i in range(batch_size):
            for j in range(batch_size):
                idx[i, j + batch_size] = -1.0 / float(batch_size * batch_size)
                idx[i + batch_size, j] = -1.0 / float(batch_size * batch_size)
    return idx


# ----------------------------------------------------------------------------
# In-kernel helpers (trace-time Python, lowered into the kernel body)
# ----------------------------------------------------------------------------
def _index_matrix_inkernel(batch_size: int, linear: bool):
    """Build the (2B,2B) f32 index matrix from iota compares (no host loop/DMA)."""
    n = 2 * batch_size
    row = lax.broadcasted_iota(jnp.int32, (n, n), 0)
    col = lax.broadcasted_iota(jnp.int32, (n, n), 1)
    r_src = row < batch_size
    c_src = col < batch_size
    r_tgt = jnp.logical_not(r_src)
    c_tgt = jnp.logical_not(c_src)
    same_block = (r_src & c_src) | (r_tgt & c_tgt)
    # index within the source/target block (avoids integer remainder on VPU)
    r_mod = jnp.where(r_src, row, row - batch_size)
    c_mod = jnp.where(c_src, col, col - batch_size)
    if linear:
        next_r = jnp.where(r_mod == batch_size - 1, 0, r_mod + 1)   # (r+1) % B
        next_c = jnp.where(c_mod == batch_size - 1, 0, c_mod + 1)   # (c+1) % B
        pos = same_block & (c_mod == next_r)                        # [s1,s2],[t1,t2]
        # [s1,t2] and [s2,t1] both live in the source-row / target-col quadrant;
        # OR (not sum) so the B==2 overlap matches the torch assignment semantics.
        neg = (r_src & c_tgt) & ((c_mod == next_r) | (r_mod == next_c))
        v = 1.0 / float(batch_size)
        return jnp.where(pos, v, 0.0) - jnp.where(neg, v, 0.0)
    else:
        off_diag = row != col
        pos_v = 1.0 / float(batch_size * (batch_size - 1))
        neg_v = 1.0 / float(batch_size * batch_size)
        return (jnp.where(same_block & off_diag, pos_v, 0.0)
                + jnp.where(jnp.logical_not(same_block), -neg_v, 0.0))


def _int_power(x, k: int):
    """x**k for integer k >= 1 via repeated squaring (pure VPU multiplies)."""
    acc, p = None, x
    while k:
        if k & 1:
            acc = p if acc is None else acc * p
        k >>= 1
        if k:
            p = p * p
    return acc


def _layer_kernel_sum(dist, mean_dist, alphas):
    """sum_a exp(-dist / (2 * a * mean_dist)), sharing ONE exponential.

    The exp is anchored at the LARGEST alpha so every smaller alpha becomes an
    integer power of the base (repeated-squaring multiplies on the VPU, which
    co-issue with the single-EUP exp).  Non-integer ratios fall back to one
    extra exp with a scalar-scaled argument (no per-element divides anywhere).
    """
    # mean == 0 (all-identical samples) -> inf/NaN, same failure mode as torch.
    pl.debug_check(mean_dist > 0.0, "JMMD: mean pairwise distance is zero")
    a_max = max(alphas)
    neg_inv_2mean = -0.5 / mean_dist                    # scalar
    base = jnp.exp(dist * (neg_inv_2mean / a_max))      # exp(-dist / (2*a_max*mean))
    total = None
    for alpha in alphas:
        ratio = a_max / alpha
        r = int(round(ratio))
        if abs(ratio - r) < 1e-9 and 1 <= r <= 64:
            term = _int_power(base, r)                  # base ** (a_max / alpha)
        else:
            term = jnp.exp(dist * (neg_inv_2mean / alpha))
        total = term if total is None else total + term
    return total


# ----------------------------------------------------------------------------
# Pallas kernel: the whole JMMD hot path in one invocation
# ----------------------------------------------------------------------------
def _jmmd_kernel(*refs, layer_alphas, batch_size, linear, use_fast_linear,
                 gram_dtype):
    out_ref = refs[-1]            # SMEM scalar output, shape (1,)
    z_refs = refs[:-1]            # pairs: (zs_l, zt_l) per layer, VMEM
    n = 2 * batch_size
    inv_n2 = 1.0 / float(n * n)

    if use_fast_linear:
        # Linear JMMD only weights ~4B kernel-matrix entries:
        #   +1/B at (i, i+1) within source and within target,
        #   -1/B at (zs_i, zt_{i+1}) and (zs_{i+1}, zt_i)        (indices mod B).
        # Compute exactly those distances with a sublane roll: O(n*D) work, no
        # (n,n) temporaries, no Gram.  The mean uses the analytic identity.
        prod = None
        for li, alphas in enumerate(layer_alphas):
            zs = z_refs[2 * li][...].astype(jnp.float32)        # (B, D)
            zt = z_refs[2 * li + 1][...].astype(jnp.float32)    # (B, D)
            # row i -> row (i+1) % B  (shift = B-1 under jnp.roll semantics)
            zs_nx = pltpu.roll(zs, batch_size - 1, 0)
            zt_nx = pltpu.roll(zt, batch_size - 1, 0)
            # (4B, D): [ss | tt | s_i->t_{i+1} | s_{i+1}->t_i]; every block is
            # sublane-aligned because this path requires B % 8 == 0.
            diff = jnp.concatenate(
                [zs - zs_nx, zt - zt_nx, zs - zt_nx, zs_nx - zt], axis=0)
            d_all = jnp.sum(diff * diff, axis=1, keepdims=True)           # (4B, 1)
            # analytic mean over all n^2 pairwise distances of concat([zs, zt])
            s_norm = jnp.sum(zs * zs) + jnp.sum(zt * zt)
            m = (jnp.sum(zs, axis=0, keepdims=True)
                 + jnp.sum(zt, axis=0, keepdims=True))                    # (1, D)
            mean_dist = (2.0 * n * s_norm - 2.0 * jnp.sum(m * m)) * inv_n2
            k_all = _layer_kernel_sum(d_all, mean_dist, alphas)           # (4B, 1)
            prod = k_all if prod is None else prod * k_all
        row = lax.broadcasted_iota(jnp.int32, (4 * batch_size, 1), 0)
        sign = jnp.where(row < n, 1.0, -1.0)     # first 2B rows +, last 2B rows -
        loss = (jnp.sum(prod * sign) * (1.0 / float(batch_size))
                + 2.0 / float(batch_size - 1))
        out_ref[0] = loss
        return

    # Dense path (non-linear index matrix, or batch not sublane-aligned).
    kernel_matrix = None
    for li, alphas in enumerate(layer_alphas):
        zs = z_refs[2 * li][...]
        zt = z_refs[2 * li + 1][...]
        z = jnp.concatenate([zs, zt], axis=0)                  # (n, D), in-VMEM concat
        zf = z if z.dtype == jnp.float32 else z.astype(jnp.float32)
        zmx = z if z.dtype == jnp.dtype(gram_dtype) else z.astype(gram_dtype)

        # Gram matrix on the MXU (f32 accumulation).
        gram = lax.dot_general(zmx, zmx, (((1,), (1,)), ((), ())),
                               preferred_element_type=jnp.float32)        # (n, n)

        # Squared norms straight from z; the lane orientation is a single XLU
        # transpose of the sublane one (no M=1 matvec through the MXU).
        sq_col = jnp.sum(zf * zf, axis=1, keepdims=True)                  # (n, 1)
        sq_row = jnp.transpose(sq_col)                                    # (1, n)
        dist = jnp.maximum(sq_col + sq_row - 2.0 * gram, 0.0)             # (n, n)

        # Analytic mean: sum_ij d_ij = 2*n*sum_i||z_i||^2 - 2*||sum_i z_i||^2
        # (O(nD) scalar math, replaces the full (n,n) cross-lane reduce).
        s_norm = jnp.sum(sq_col)
        m = jnp.sum(zf, axis=0, keepdims=True)                            # (1, D)
        mean_dist = (2.0 * n * s_norm - 2.0 * jnp.sum(m * m)) * inv_n2

        layer_kernel = _layer_kernel_sum(dist, mean_dist, alphas)
        kernel_matrix = (layer_kernel if kernel_matrix is None
                         else kernel_matrix * layer_kernel)

    index_matrix = _index_matrix_inkernel(batch_size, linear)
    loss = jnp.sum(kernel_matrix * index_matrix) + 2.0 / float(batch_size - 1)
    out_ref[0] = loss


# ----------------------------------------------------------------------------
# Wrapper
# ----------------------------------------------------------------------------
def jmmd_loss_pallas(z_s, z_t, layer_alphas, linear=True,
                     gram_dtype=jnp.float32, force_dense=False):
    """z_s / z_t: tuples of (B, *) arrays (one per layer), original dtype.

    gram_dtype: dtype fed to the MXU for the Gram matmul on the dense path
    (float32 default; bf16 is opt-in -- distances / exponentials stay in f32).
    force_dense: disable the linear O(n*D) shortcut (testing / debugging).
    """
    batch_size = int(z_s[0].shape[0])
    if batch_size < 2:
        raise ValueError("JMMD requires batch_size >= 2 (loss adds 2/(B-1)).")
    feats = []
    for zs, zt in zip(z_s, z_t):
        feats.append(zs.reshape(batch_size, -1))   # keep original dtype, no concat,
        feats.append(zt.reshape(batch_size, -1))   # no upcast through HBM

    use_fast_linear = bool(linear) and batch_size % 8 == 0 and not force_dense

    kernel = functools.partial(
        _jmmd_kernel,
        layer_alphas=tuple(tuple(float(a) for a in la) for la in layer_alphas),
        batch_size=batch_size,
        linear=bool(linear),
        use_fast_linear=use_fast_linear,
        gram_dtype=gram_dtype,
    )

    # VMEM budget from the actual tensors, capped at ~75% of this chip's VMEM
    # (~48 MiB on v7x, ~96 MiB on v5e/v6e).
    n = 2 * batch_size
    d_max = max(int(f.shape[1]) for f in feats)
    in_bytes = sum(int(np.prod(f.shape)) * f.dtype.itemsize for f in feats)
    if use_fast_linear:
        est = 2 * in_bytes + 12 * batch_size * d_max * 4
    else:
        est = 2 * in_bytes + 10 * n * n * 4 + 4 * n * d_max * 4
    try:
        vmem_cap = int(pltpu.get_tpu_info().vmem_capacity_bytes)
    except Exception:                      # conservative (v7x-sized) fallback
        vmem_cap = 64 * 1024 * 1024
    vmem_limit = int(min(max(est, 32 * 1024 * 1024), int(0.75 * vmem_cap)))

    out = pl.pallas_call(
        kernel,
        out_shape=jax.ShapeDtypeStruct((1,), jnp.float32),
        in_specs=[pl.BlockSpec(memory_space=pltpu.MemorySpace.VMEM)
                  for _ in feats],
        out_specs=pl.BlockSpec(memory_space=pltpu.MemorySpace.SMEM),
        compiler_params=pltpu.CompilerParams(vmem_limit_bytes=vmem_limit),
    )(*feats)
    return out[0]


# ----------------------------------------------------------------------------
# Pure-JAX reference (torch-equivalent math) for correctness checks
# ----------------------------------------------------------------------------
def jmmd_loss_ref(z_s, z_t, layer_alphas, linear=True):
    batch_size = int(z_s[0].shape[0])
    index_matrix = jnp.asarray(_update_index_matrix(batch_size, linear))
    kernel_matrix = jnp.ones_like(index_matrix)
    for zs, zt, alphas in zip(z_s, z_t, layer_alphas):
        z = jnp.concatenate([zs.reshape(batch_size, -1),
                             zt.reshape(batch_size, -1)], axis=0).astype(jnp.float32)
        diff = z[None, :, :] - z[:, None, :]
        dist = jnp.sum(diff * diff, axis=-1)
        mean_dist = jnp.mean(dist)
        layer_kernel = sum(jnp.exp(-dist / (2.0 * a * mean_dist)) for a in alphas)
        kernel_matrix = kernel_matrix * layer_kernel
    return jnp.sum(kernel_matrix * index_matrix) + 2.0 / float(batch_size - 1)


if __name__ == "__main__":
    key = jax.random.PRNGKey(0)
    batch_size = 8
    d1, d2 = 32, 64
    # kernels: layer1 -> GaussianKernel(0.5), (1.), (2.); layer2 -> GaussianKernel(1.)
    layer_alphas = ((0.5, 1.0, 2.0), (1.0,))

    k1, k2, k3, k4 = jax.random.split(key, 4)
    z_s = (jax.random.normal(k1, (batch_size, d1), jnp.float32),
           jax.random.normal(k3, (batch_size, d2), jnp.float32))
    z_t = (jax.random.normal(k2, (batch_size, d1), jnp.float32),
           jax.random.normal(k4, (batch_size, d2), jnp.float32))

    # --- linear mode, B % 8 == 0: O(n*D) shifted-row fast path ---
    ref_lin = jax.block_until_ready(jmmd_loss_ref(z_s, z_t, layer_alphas, linear=True))
    out_lin = jax.block_until_ready(
        jmmd_loss_pallas(z_s, z_t, layer_alphas, linear=True))
    np.testing.assert_allclose(np.asarray(out_lin), np.asarray(ref_lin),
                               rtol=1e-4, atol=1e-4)

    # --- linear mode, dense fallback forced (covers in-kernel index matrix) ---
    out_lin_dense = jax.block_until_ready(
        jmmd_loss_pallas(z_s, z_t, layer_alphas, linear=True, force_dense=True))
    np.testing.assert_allclose(np.asarray(out_lin_dense), np.asarray(ref_lin),
                               rtol=1e-4, atol=1e-4)

    # --- non-linear mode (dense path), f32 Gram ---
    ref_nl = jax.block_until_ready(jmmd_loss_ref(z_s, z_t, layer_alphas, linear=False))
    out_nl = jax.block_until_ready(
        jmmd_loss_pallas(z_s, z_t, layer_alphas, linear=False))
    np.testing.assert_allclose(np.asarray(out_nl), np.asarray(ref_nl),
                               rtol=1e-4, atol=1e-4)

    # --- non-linear mode with bf16 MXU operands (f32 accumulation) -- relaxed ---
    out_nl_bf16 = jax.block_until_ready(
        jmmd_loss_pallas(z_s, z_t, layer_alphas, linear=False,
                         gram_dtype=jnp.bfloat16))
    np.testing.assert_allclose(np.asarray(out_nl_bf16), np.asarray(ref_nl),
                               rtol=2e-2, atol=2e-2)

    print("KERNEL_OK")
</pallas_src>

<mosaic_0001>
module attributes {stable_mosaic.version = 11 : i64} {
  func.func @_jmmd_kernel(%arg0: memref<8x32xf32, #tpu.memory_space<vmem>>, %arg1: memref<8x32xf32, #tpu.memory_space<vmem>>, %arg2: memref<8x64xf32, #tpu.memory_space<vmem>>, %arg3: memref<8x64xf32, #tpu.memory_space<vmem>>, %arg4: memref<1xf32, #tpu.memory_space<smem>>) attributes {dimension_semantics = [], scalar_prefetch = 0 : i64, scratch_operands = 0 : i64, tpu.core_type = #tpu.core_type<tc>} {
    %c0 = arith.constant 0 : index
    %c0_0 = arith.constant 0 : index
    %0 = vector.load %arg0[%c0, %c0_0] : memref<8x32xf32, #tpu.memory_space<vmem>>, vector<8x32xf32>
    %c0_1 = arith.constant 0 : index
    %c0_2 = arith.constant 0 : index
    %1 = vector.load %arg1[%c0_1, %c0_2] : memref<8x32xf32, #tpu.memory_space<vmem>>, vector<8x32xf32>
    %c7_i32 = arith.constant 7 : i32
    %2 = tpu.dynamic_rotate %0 by %c7_i32 dim 0 : vector<8x32xf32>, i32 -> vector<8x32xf32>
    %c7_i32_3 = arith.constant 7 : i32
    %3 = tpu.dynamic_rotate %1 by %c7_i32_3 dim 0 : vector<8x32xf32>, i32 -> vector<8x32xf32>
    %4 = arith.subf %0, %2 : vector<8x32xf32>
    %5 = arith.subf %1, %3 : vector<8x32xf32>
    %6 = arith.subf %0, %3 : vector<8x32xf32>
    %7 = arith.subf %2, %1 : vector<8x32xf32>
    %8 = tpu.concatenate %4, %5, %6, %7 in 0 : vector<8x32xf32>, vector<8x32xf32>, vector<8x32xf32>, vector<8x32xf32> -> vector<32x32xf32>
    %9 = arith.mulf %8, %8 : vector<32x32xf32>
    %cst = arith.constant dense<0.000000e+00> : vector<32xf32>
    %10 = vector.multi_reduction <add>, %9, %cst [1] : vector<32x32xf32> to vector<32xf32>
    %11 = vector.shape_cast %10 : vector<32xf32> to vector<32x1xf32>
    %12 = arith.mulf %0, %0 : vector<8x32xf32>
    %13 = vector.shape_cast %12 : vector<8x32xf32> to vector<1x8x32xf32>
    %cst_4 = arith.constant dense<0.000000e+00> : vector<1xf32>
    %14 = vector.multi_reduction <add>, %13, %cst_4 [1, 2] : vector<1x8x32xf32> to vector<1xf32>
    %15 = vector.shape_cast %14 : vector<1xf32> to vector<1x1x1xf32>
    %16 = vector.extract %15[0, 0, 0] : f32 from vector<1x1x1xf32>
    %17 = arith.mulf %1, %1 : vector<8x32xf32>
    %18 = vector.shape_cast %17 : vector<8x32xf32> to vector<1x8x32xf32>
    %cst_5 = arith.constant dense<0.000000e+00> : vector<1xf32>
    %19 = vector.multi_reduction <add>, %18, %cst_5 [1, 2] : vector<1x8x32xf32> to vector<1xf32>
    %20 = vector.shape_cast %19 : vector<1xf32> to vector<1x1x1xf32>
    %21 = vector.extract %20[0, 0, 0] : f32 from vector<1x1x1xf32>
    %22 = arith.addf %16, %21 : f32
    %cst_6 = arith.constant dense<0.000000e+00> : vector<32xf32>
    %23 = vector.multi_reduction <add>, %0, %cst_6 [0] : vector<8x32xf32> to vector<32xf32>
    %24 = vector.shape_cast %23 : vector<32xf32> to vector<1x32xf32>
    %cst_7 = arith.constant dense<0.000000e+00> : vector<32xf32>
    %25 = vector.multi_reduction <add>, %1, %cst_7 [0] : vector<8x32xf32> to vector<32xf32>
    %26 = vector.shape_cast %25 : vector<32xf32> to vector<1x32xf32>
    %27 = arith.addf %24, %26 : vector<1x32xf32>
    %cst_8 = arith.constant 3.200000e+01 : f32
    %28 = arith.mulf %cst_8, %22 : f32
    %29 = arith.mulf %27, %27 : vector<1x32xf32>
    %30 = vector.shape_cast %29 : vector<1x32xf32> to vector<1x1x32xf32>
    %cst_9 = arith.constant dense<0.000000e+00> : vector<1xf32>
    %31 = vector.multi_reduction <add>, %30, %cst_9 [1, 2] : vector<1x1x32xf32> to vector<1xf32>
    %32 = vector.shape_cast %31 : vector<1xf32> to vector<1x1x1xf32>
    %33 = vector.extract %32[0, 0, 0] : f32 from vector<1x1x1xf32>
    %cst_10 = arith.constant 2.000000e+00 : f32
    %34 = arith.mulf %cst_10, %33 : f32
    %35 = arith.subf %28, %34 : f32
    %cst_11 = arith.constant 3.906250e-03 : f32
    %36 = arith.mulf %35, %cst_11 : f32
    %cst_12 = arith.constant 0.000000e+00 : f32
    %37 = arith.cmpf ogt, %36, %cst_12 : f32
    %true = arith.constant true
    %38 = arith.xori %37, %true : i1
    %false = arith.constant false
    %39 = arith.ori %false, %38 : i1
    %false_13 = arith.constant false
    %c1_i32 = arith.constant 1 : i32
    %c-1_i32 = arith.constant -1 : i32
    %40 = arith.select %false_13, %c-1_i32, %c1_i32 : i32
    %cst_14 = arith.constant -5.000000e-01 : f32
    %41 = arith.divf %cst_14, %36 : f32
    %cst_15 = arith.constant 2.000000e+00 : f32
    %42 = arith.divf %41, %cst_15 : f32
    %43 = vector.broadcast %42 : f32 to vector<32x1xf32>
    %44 = arith.mulf %11, %43 : vector<32x1xf32>
    %45 = math.exp %44 : vector<32x1xf32>
    %46 = arith.mulf %45, %45 : vector<32x1xf32>
    %47 = arith.mulf %46, %46 : vector<32x1xf32>
    %48 = arith.mulf %45, %45 : vector<32x1xf32>
    %49 = arith.addf %47, %48 : vector<32x1xf32>
    %50 = arith.addf %49, %45 : vector<32x1xf32>
    %c0_16 = arith.constant 0 : index
    %c0_17 = arith.constant 0 : index
    %51 = vector.load %arg2[%c0_16, %c0_17] : memref<8x64xf32, #tpu.memory_space<vmem>>, vector<8x64xf32>
    %c0_18 = arith.constant 0 : index
    %c0_19 = arith.constant 0 : index
    %52 = vector.load %arg3[%c0_18, %c0_19] : memref<8x64xf32, #tpu.memory_space<vmem>>, vector<8x64xf32>
    %c7_i32_20 = arith.constant 7 : i32
    %53 = tpu.dynamic_rotate %51 by %c7_i32_20 dim 0 : vector<8x64xf32>, i32 -> vector<8x64xf32>
    %c7_i32_21 = arith.constant 7 : i32
    %54 = tpu.dynamic_rotate %52 by %c7_i32_21 dim 0 : vector<8x64xf32>, i32 -> vector<8x64xf32>
    %55 = arith.subf %51, %53 : vector<8x64xf32>
    %56 = arith.subf %52, %54 : vector<8x64xf32>
    %57 = arith.subf %51, %54 : vector<8x64xf32>
    %58 = arith.subf %53, %52 : vector<8x64xf32>
    %59 = tpu.concatenate %55, %56, %57, %58 in 0 : vector<8x64xf32>, vector<8x64xf32>, vector<8x64xf32>, vector<8x64xf32> -> vector<32x64xf32>
    %60 = arith.mulf %59, %59 : vector<32x64xf32>
    %cst_22 = arith.constant dense<0.000000e+00> : vector<32xf32>
    %61 = vector.multi_reduction <add>, %60, %cst_22 [1] : vector<32x64xf32> to vector<32xf32>
    %62 = vector.shape_cast %61 : vector<32xf32> to vector<32x1xf32>
    %63 = arith.mulf %51, %51 : vector<8x64xf32>
    %64 = vector.shape_cast %63 : vector<8x64xf32> to vector<1x8x64xf32>
    %cst_23 = arith.constant dense<0.000000e+00> : vector<1xf32>
    %65 = vector.multi_reduction <add>, %64, %cst_23 [1, 2] : vector<1x8x64xf32> to vector<1xf32>
    %66 = vector.shape_cast %65 : vector<1xf32> to vector<1x1x1xf32>
    %67 = vector.extract %66[0, 0, 0] : f32 from vector<1x1x1xf32>
    %68 = arith.mulf %52, %52 : vector<8x64xf32>
    %69 = vector.shape_cast %68 : vector<8x64xf32> to vector<1x8x64xf32>
    %cst_24 = arith.constant dense<0.000000e+00> : vector<1xf32>
    %70 = vector.multi_reduction <add>, %69, %cst_24 [1, 2] : vector<1x8x64xf32> to vector<1xf32>
    %71 = vector.shape_cast %70 : vector<1xf32> to vector<1x1x1xf32>
    %72 = vector.extract %71[0, 0, 0] : f32 from vector<1x1x1xf32>
    %73 = arith.addf %67, %72 : f32
    %cst_25 = arith.constant dense<0.000000e+00> : vector<64xf32>
    %74 = vector.multi_reduction <add>, %51, %cst_25 [0] : vector<8x64xf32> to vector<64xf32>
    %75 = vector.shape_cast %74 : vector<64xf32> to vector<1x64xf32>
    %cst_26 = arith.constant dense<0.000000e+00> : vector<64xf32>
    %76 = vector.multi_reduction <add>, %52, %cst_26 [0] : vector<8x64xf32> to vector<64xf32>
    %77 = vector.shape_cast %76 : vector<64xf32> to vector<1x64xf32>
    %78 = arith.addf %75, %77 : vector<1x64xf32>
    %cst_27 = arith.constant 3.200000e+01 : f32
    %79 = arith.mulf %cst_27, %73 : f32
    %80 = arith.mulf %78, %78 : vector<1x64xf32>
    %81 = vector.shape_cast %80 : vector<1x64xf32> to vector<1x1x64xf32>
    %cst_28 = arith.constant dense<0.000000e+00> : vector<1xf32>
    %82 = vector.multi_reduction <add>, %81, %cst_28 [1, 2] : vector<1x1x64xf32> to vector<1xf32>
    %83 = vector.shape_cast %82 : vector<1xf32> to vector<1x1x1xf32>
    %84 = vector.extract %83[0, 0, 0] : f32 from vector<1x1x1xf32>
    %cst_29 = arith.constant 2.000000e+00 : f32
    %85 = arith.mulf %cst_29, %84 : f32
    %86 = arith.subf %79, %85 : f32
    %cst_30 = arith.constant 3.906250e-03 : f32
    %87 = arith.mulf %86, %cst_30 : f32
    %cst_31 = arith.constant 0.000000e+00 : f32
    %88 = arith.cmpf ogt, %87, %cst_31 : f32
    %true_32 = arith.constant true
    %89 = arith.xori %88, %true_32 : i1
    %false_33 = arith.constant false
    %90 = arith.ori %false_33, %89 : i1
    %false_34 = arith.constant false
    %c2_i32 = arith.constant 2 : i32
    %c-1_i32_35 = arith.constant -1 : i32
    %91 = arith.select %false_34, %c-1_i32_35, %c2_i32 : i32
    %cst_36 = arith.constant -5.000000e-01 : f32
    %92 = arith.divf %cst_36, %87 : f32
    %cst_37 = arith.constant 1.000000e+00 : f32
    %93 = arith.divf %92, %cst_37 : f32
    %94 = vector.broadcast %93 : f32 to vector<32x1xf32>
    %95 = arith.mulf %62, %94 : vector<32x1xf32>
    %96 = math.exp %95 : vector<32x1xf32>
    %97 = arith.mulf %50, %96 : vector<32x1xf32>
    %98 = tpu.iota {dimensions = array<i32: 0>} : vector<32x1xi32>
    %c16_i32 = arith.constant 16 : i32
    %99 = vector.broadcast %c16_i32 : i32 to vector<32x1xi32>
    %100 = arith.cmpi slt, %98, %99 : vector<32x1xi32>
    %cst_38 = arith.constant 1.000000e+00 : f32
    %cst_39 = arith.constant -1.000000e+00 : f32
    %101 = vector.broadcast %cst_38 : f32 to vector<32x1xf32>
    %102 = vector.broadcast %cst_39 : f32 to vector<32x1xf32>
    %103 = arith.select %100, %101, %102 : vector<32x1xi1>, vector<32x1xf32>
    %104 = arith.mulf %97, %103 : vector<32x1xf32>
    %105 = vector.shape_cast %104 : vector<32x1xf32> to vector<1x32x1xf32>
    %cst_40 = arith.constant dense<0.000000e+00> : vector<1xf32>
    %106 = vector.multi_reduction <add>, %105, %cst_40 [1, 2] : vector<1x32x1xf32> to vector<1xf32>
    %107 = vector.shape_cast %106 : vector<1xf32> to vector<1x1x1xf32>
    %108 = vector.extract %107[0, 0, 0] : f32 from vector<1x1x1xf32>
    %cst_41 = arith.constant 1.250000e-01 : f32
    %109 = arith.mulf %108, %cst_41 : f32
    %cst_42 = arith.constant 0.285714298 : f32
    %110 = arith.addf %109, %cst_42 : f32
    %c0_43 = arith.constant 0 : index
    %111 = memref.load %arg4[%c0_43] : memref<1xf32, #tpu.memory_space<smem>>
    memref.store %110, %arg4[%c0_43] : memref<1xf32, #tpu.memory_space<smem>>
    return
  }
}

</mosaic_0001>

<bundles_post_ra>
// kernel: tpu_custom_call.1
= control target key start
LH: loop header
LB: loop body
LE: loop exit
PB: predicated region body
PF: predicated region fallthrough
CT: control target
= control target key end

     0   :  { %9 = vsyncpa [#allocation3], 0  ;;  %s569_s0 = inlined_call_operand.hbm [shape: f32[8,32], index: 0, kind: input, shape index: {}]   ;;  %s570_s1 = inlined_call_operand.hbm [shape: f32[8,32], index: 1, kind: input, shape index: {}]   ;;  %s571_s2 = inlined_call_operand.hbm [shape: f32[8,64], index: 2, kind: input, shape index: {}]   ;;  %s572_s3 = inlined_call_operand.vmem [shape: f32[8,64], index: 3, kind: input, shape index: {}]   ;;  %s573_s4 = inlined_call_operand.hbm [shape: f32[1], index: 4, kind: output, shape index: {}]  }
   0x1   :  { %10 = vsyncpa [#allocation6], 0 }
   0x2   :  { %11 = vsyncpa [#allocation4], 0  ;;  %s445_s15 = smov [#allocation5]   ;;  %s446_s17 = smov [#allocation2]  }
   0x3   :  { %s28_s16 = sshll.u32 %s445_s15, 4  ;;  %s18_s18 = sshll.u32 %s446_s17, 4  ;;  %s29_s16 = int_to_ptr.vmem [resolvable:$true] %s28_s16  ;;  %s19_s18 = int_to_ptr.vmem [resolvable:$true] %s18_s18 }
   0x4   :  { %s363_s21 = scalar_lea.hbm %s570_s1, 128 }
   0x5   :  { %p364_p0 = scmp.ne.s32.totalorder %s570_s1, %s363_s21  ;;  %p367_p1 = scmp.lt.u32.totalorder %s363_s21, %s570_s1 }
   0x7   :  { %p369_p2 = pnand %p367_p1, %p364_p0 }
   0x9   :  { %372 = shalt.err (!%p369_p2)
}
   0xa   :  { %s373_s26 = scalar_lea.vmem %s29_s16, 128  ;;  %p378_p4 = scmp.lt.s32.totalorder %s29_s16, %s29_s16 }
   0xb   :  { %p374_p3 = scmp.ne.s32.totalorder %s29_s16, %s373_s26  ;;  %p379_p5 = scmp.lt.s32.totalorder %s373_s26, %s373_s26 }
   0xd   :  { %p380_p6 = por %p379_p5, %p378_p4 }
   0xf   :  { %p381_p7 = pnand %p380_p6, %p374_p3 }
  0x11   :  { %384 = shalt.err (!%p381_p7)
}
  0x12   :  { %31 = dma.hbm_to_vmem [thread:$0]  %s570_s1, 128, %s29_s16, [#allocation6]  }
  0x13   :  { %s385_s5 = scalar_lea.hbm %s569_s0, 128 }
  0x14   :  { %p386_p8 = scmp.ne.s32.totalorder %s569_s0, %s385_s5  ;;  %p389_p9 = scmp.lt.u32.totalorder %s385_s5, %s569_s0 }
  0x16   :  { %p391_p10 = pnand %p389_p9, %p386_p8 }
  0x18   :  { %394 = shalt.err (!%p391_p10)
}
  0x19   :  { %s395_s10 = scalar_lea.vmem %s19_s18, 128  ;;  %p400_p12 = scmp.lt.s32.totalorder %s19_s18, %s19_s18 }
  0x1a   :  { %p396_p11 = scmp.ne.s32.totalorder %s19_s18, %s395_s10  ;;  %p401_p13 = scmp.lt.s32.totalorder %s395_s10, %s395_s10 }
  0x1c   :  { %p402_p0 = por %p401_p13, %p400_p12 }
  0x1e   :  { %p403_p1 = pnand %p402_p0, %p396_p11 }
  0x20   :  { %406 = shalt.err (!%p403_p1)
}
  0x21   :  { %21 = dma.hbm_to_vmem [thread:$0]  %s569_s0, 128, %s19_s18, [#allocation3]  }
  0x22   :  { %s447_s12 = smov [#allocation7]   ;;  %s407_s16 = scalar_lea.hbm %s571_s2, 128 }
  0x23   :  { %s38_s13 = sshll.u32 %s447_s12, 4  ;;  %p408_p2 = scmp.ne.s32.totalorder %s571_s2, %s407_s16  ;;  %s39_s13 = int_to_ptr.vmem [resolvable:$true] %s38_s13 }
  0x24   :  { %p411_p3 = scmp.lt.u32.totalorder %s407_s16, %s571_s2 }
  0x26   :  { %p413_p4 = pnand %p411_p3, %p408_p2 }
  0x28   :  { %416 = shalt.err (!%p413_p4)
}
  0x29   :  { %s417_s22 = scalar_lea.vmem %s39_s13, 128  ;;  %p422_p6 = scmp.lt.s32.totalorder %s39_s13, %s39_s13 }
  0x2a   :  { %p418_p5 = scmp.ne.s32.totalorder %s39_s13, %s417_s22  ;;  %p423_p7 = scmp.lt.s32.totalorder %s417_s22, %s417_s22 }
  0x2c   :  { %p424_p8 = por %p423_p7, %p422_p6 }
  0x2e   :  { %p425_p9 = pnand %p424_p8, %p418_p5 }
  0x30   :  { %428 = shalt.err (!%p425_p9)
}
  0x31   :  { %41 = dma.hbm_to_vmem [thread:$0]  %s571_s2, 128, %s39_s13, [#allocation6]  }
  0x32   :  { %439 = dma.done.wait [#allocation3], 128  }
  0x33   :  { %440 = vsyncadd [#allocation3], 4294967168 }
  0x34   :  { %441 = dma.done.wait [#allocation6], 256  }
  0x35   :  { %442 = vsyncadd [#allocation6], 4294967040  ;;  %vm65_vm0 = vcmask 261120   ;;  %v510_v0 = vld [vmem:[#allocation2] sm:$0xff]  ;;  %v54_v1 = vld [vmem:[#allocation5] sm:$0xff]  ;;  %vm180_vm1 = vcmask 523264  }
  0x36   :  { %v512_v2 = vld [vmem:[#allocation7] sm:$0xff]  ;;  %v78_v3 = vmul.f32 %v510_v0, %v510_v0  ;;  %v89_v4 = vmul.f32 %v54_v1, %v54_v1  ;;  %v101_v5 = vsel %vm65_vm0, %v510_v0, 0.0  ;;  %v108_v6 = vsel %vm65_vm0, %v54_v1, 0.0  ;;  %v522_v7 = vld [vmem:[%s572_s3] sm:$0xff]  ;;  %s429_s0 = scalar_lea.hbm %s573_s4, 16 }
  0x37   :  { %v102_v8 = vrot.slane %v101_v5, 4  ;;  %v109_v9 = vrot.slane %v108_v6, 4  ;;  %v216_v11 = vsel %vm180_vm1, %v512_v2, 0.0  ;;  %v223_v12 = vsel %vm180_vm1, %v522_v7, 0.0  ;;  %p430_p10 = scmp.ne.s32.totalorder %s573_s4, %s429_s0  ;;  %p433_p11 = scmp.lt.u32.totalorder %s429_s0, %s573_s4 }
  0x38   :  { %v79_v10 = vsel %vm65_vm0, %v78_v3, 0.0  ;;  %v90_v15 = vsel %vm65_vm0, %v89_v4, 0.0  ;;  %v204_v16 = vmul.f32 %v522_v7, %v522_v7  ;;  %v217_v17 = vrot.slane %v216_v11, 4 }
  0x39   :  { %80 = vadd.xlane.f32.xlu0 %v79_v10  ;;  %v103_v13 = vadd.f32 %v102_v8, %v101_v5  ;;  %v110_v14 = vadd.f32 %v109_v9, %v108_v6  ;;  %v224_v18 = vrot.slane %v223_v12, 4  ;;  %vm118_vm2 = vcmask 253952   ;;  %p435_p12 = pnand %p433_p11, %p430_p10 }
  0x3a   :  { %v218_v21 = vadd.f32 %v217_v17, %v216_v11  ;;  %v205_v25 = vsel %vm180_vm1, %v204_v16, 0.0  ;;  %v55_v39 = vrot.slane %v510_v0, 1  ;;  %v193_v41 = vmul.f32 %v512_v2, %v512_v2 }
  0x3b   :  { %v104_v19 = vrot.slane %v103_v13, 2  ;;  %v111_v20 = vrot.slane %v110_v14, 2  ;;  %v225_v22 = vadd.f32 %v224_v18, %v223_v12  ;;  %v56_v42 = vrot.slane %v54_v1, 1 }
  0x3c   :  { %v219_v26 = vrot.slane %v218_v21, 2  ;;  %v57_v44 = vsub.f32 %v510_v0, %v55_v39  ;;  %v194_v47 = vsel %vm180_vm1, %v193_v41, 0.0  ;;  %vm233_vm3 = vcmask 516096  }
  0x3d   :  { %91 = vadd.xlane.f32.xlu0 %v90_v15  ;;  %v105_v23 = vadd.f32 %v104_v19, %v103_v13  ;;  %v112_v24 = vadd.f32 %v111_v20, %v110_v14  ;;  %v226_v27 = vrot.slane %v225_v22, 2  ;;  %v58_v49 = vsub.f32 %v54_v1, %v56_v42 }
  0x3e   :  { %v220_v30 = vadd.f32 %v219_v26, %v218_v21  ;;  %v61_v46 = vmul.f32 %v57_v44, %v57_v44  ;;  %v59_v51 = vsub.f32 %v510_v0, %v56_v42  ;;  %v60_v54 = vsub.f32 %v55_v39, %v54_v1 }
  0x3f   :  { %v106_v28 = vrot.slane %v105_v23, 1  ;;  %v113_v29 = vrot.slane %v112_v24, 1  ;;  %v227_v31 = vadd.f32 %v226_v27, %v225_v22  ;;  %v62_v53 = vmul.f32 %v58_v49, %v58_v49 }
  0x40   :  { %v221_v34 = vrot.slane %v220_v30, 1  ;;  %v66_v50 = vsel %vm65_vm0, %v61_v46, 0.0  ;;  %v63_v55 = vmul.f32 %v59_v51, %v59_v51  ;;  %v64_v58 = vmul.f32 %v60_v54, %v60_v54 }
  0x41   :  { %v107_v32 = vadd.f32 %v106_v28, %v105_v23  ;;  %v114_v33 = vadd.f32 %v113_v29, %v112_v24  ;;  %206 = vadd.xlane.f32.xlu0 %v205_v25  ;;  %v228_v35 = vrot.slane %v227_v31, 1  ;;  %v69_v57 = vsel %vm65_vm0, %v62_v53, 0.0 }
  0x42   :  { %v222_v37 = vadd.f32 %v221_v34, %v220_v30  ;;  %v72_v56 = vsel %vm65_vm0, %v63_v55, 0.0  ;;  %v75_v59 = vsel %vm65_vm0, %v64_v58, 0.0  ;;  %v171_v60 = vrot.slane %v522_v7, 1 }
  0x43   :  { %v115_v36 = vadd.f32 %v114_v33, %v107_v32  ;;  %v229_v38 = vadd.f32 %v228_v35, %v227_v31  ;;  %v170_v61 = vrot.slane %v512_v2, 1  ;;  %vm285_vm4 = vcmask 7168  }
  0x44   :  { %v173_v62 = vsub.f32 %v522_v7, %v171_v60  ;;  %v174_v6 = vsub.f32 %v512_v2, %v171_v60 }
  0x45   :  { %v117_v40 = vmul.f32 %v115_v36, %v115_v36  ;;  %v230_v43 = vadd.f32 %v229_v38, %v222_v37  ;;  %67 = vadd.xlane.f32.xlu0 %v66_v50  ;;  %v172_v63 = vsub.f32 %v512_v2, %v170_v61  ;;  %v175_v5 = vsub.f32 %v170_v61, %v522_v7 }
  0x46   :  { %v177_v0 = vmul.f32 %v173_v62, %v173_v62  ;;  %v178_v9 = vmul.f32 %v174_v6, %v174_v6 }
  0x47   :  { %v119_v45 = vsel %vm118_vm2, %v117_v40, 0.0  ;;  %v232_v48 = vmul.f32 %v230_v43, %v230_v43  ;;  %v176_v1 = vmul.f32 %v172_v63, %v172_v63  ;;  %v179_v8 = vmul.f32 %v175_v5, %v175_v5 }
  0x48   :  { %120 = vadd.xlane.f32.xlu1 %v119_v45  ;;  %v184_v3 = vsel %vm180_vm1, %v177_v0, 0.0  ;;  %v187_v11 = vsel %vm180_vm1, %v178_v9, 0.0 }
  0x49   :  { %v234_v52 = vsel %vm233_vm3, %v232_v48, 0.0  ;;  %73 = vadd.xlane.f32.xlu0 %v72_v56  ;;  %v181_v4 = vsel %vm180_vm1, %v176_v1, 0.0  ;;  %v190_v10 = vsel %vm180_vm1, %v179_v8, 0.0 }
  0x4c   :  { %195 = vadd.xlane.f32.xlu1 %v194_v47 }
  0x4d   :  { %182 = vadd.xlane.f32.xlu0 %v181_v4 }
  0x50   :  { %235 = vadd.xlane.f32.xlu1 %v234_v52 }
  0x51   :  { %188 = vadd.xlane.f32.xlu0 %v187_v11 }
  0x54   :  { %70 = vadd.xlane.f32.xlu1 %v69_v57 }
  0x58   :  { %76 = vadd.xlane.f32.xlu1 %v75_v59 }
  0x5c   :  { %185 = vadd.xlane.f32.xlu1 %v184_v3 }
  0x60   :  { %191 = vadd.xlane.f32.xlu1 %v190_v10 }
  0xc6   :  { %v81_v12 = vpop.xlane.xlu0 %80 }
  0xc7   :  { %v82_v13 = vrot.slane %v81_v12, 4 }
  0xc9   :  { %v83_v14 = vadd.f32 %v82_v13, %v81_v12 }
  0xca   :  { %v92_v15 = vpop.xlane.xlu0 %91 }
  0xcb   :  { %v84_v16 = vrot.slane %v83_v14, 2  ;;  %v93_v17 = vrot.slane %v92_v15, 4 }
  0xcd   :  { %v94_v18 = vadd.f32 %v93_v17, %v92_v15  ;;  %v85_v7 = vadd.f32 %v84_v16, %v83_v14 }
  0xce   :  { %v207_v32 = vpop.xlane.xlu0 %206 }
  0xcf   :  { %v95_v19 = vrot.slane %v94_v18, 2  ;;  %v86_v2 = vrot.slane %v85_v7, 1  ;;  %v208_v35 = vrot.slane %v207_v32, 4 }
  0xd1   :  { %v87_v20 = vadd.f32 %v86_v2, %v85_v7  ;;  %v96_v21 = vadd.f32 %v95_v19, %v94_v18  ;;  %v209_v38 = vadd.f32 %v208_v35, %v207_v32 }
  0xd2   :  { %v68_v57 = vpop.xlane.xlu0 %67 }
  0xd3   :  { %321 = vpush %v87_v20  ;;  %v97_v22 = vrot.slane %v96_v21, 1  ;;  %v210_v42 = vrot.slane %v209_v38, 2 }
  0xd5   :  { %v121_v23 = vpop.xlane.xlu1 %120  ;;  %v98_v24 = vadd.f32 %v97_v22, %v96_v21  ;;  %v211_v45 = vadd.f32 %v210_v42, %v209_v38 }
  0xd6   :  { %v122_v25 = vrot.slane %v121_v23, 4  ;;  %v74_v61 = vpop.xlane.xlu0 %73 }
  0xd7   :  { %323 = vpush %v98_v24  ;;  %v212_v48 = vrot.slane %v211_v45, 1 }
  0xd8   :  { %v123_v26 = vadd.f32 %v122_v25, %v121_v23 }
  0xd9   :  { %v196_v31 = vpop.xlane.xlu1 %195  ;;  %v213_v52 = vadd.f32 %v212_v48, %v211_v45 }
  0xda   :  { %v124_v27 = vrot.slane %v123_v26, 2  ;;  %v197_v34 = vrot.slane %v196_v31, 4  ;;  %v183_v8 = vpop.xlane.xlu0 %182 }
  0xdc   :  { %v125_v28 = vadd.f32 %v124_v27, %v123_v26  ;;  %v198_v37 = vadd.f32 %v197_v34, %v196_v31 }
  0xdd   :  { %v236_v33 = vpop.xlane.xlu1 %235 }
  0xde   :  { %v126_v29 = vrot.slane %v125_v28, 1  ;;  %v237_v36 = vrot.slane %v236_v33, 4  ;;  %v199_v40 = vrot.slane %v198_v37, 2  ;;  %v189_v10 = vpop.xlane.xlu0 %188 }
  0xe0   :  { %v127_v30 = vadd.f32 %v126_v29, %v125_v28  ;;  %v238_v39 = vadd.f32 %v237_v36, %v236_v33  ;;  %v200_v44 = vadd.f32 %v199_v40, %v198_v37 }
  0xe1   :  { %v71_v56 = vpop.xlane.xlu1 %70 }
  0xe2   :  { %325 = vpush %v127_v30  ;;  %v239_v43 = vrot.slane %v238_v39, 2  ;;  %v201_v47 = vrot.slane %v200_v44, 1 }
  0xe4   :  { %v240_v46 = vadd.f32 %v239_v43, %v238_v39  ;;  %v202_v51 = vadd.f32 %v201_v47, %v200_v44 }
  0xe5   :  { %v77_v59 = vpop.xlane.xlu1 %76 }
  0xe6   :  { %v241_v49 = vrot.slane %v240_v46, 1 }
  0xe8   :  { %v242_v53 = vadd.f32 %v241_v49, %v240_v46 }
  0xe9   :  { %v186_v6 = vpop.xlane.xlu1 %185 }
  0xed   :  { %v192_v9 = vpop.xlane.xlu1 %191 }
 0x104   :  { %s322_s3 = spop %321 }
 0x108   :  { %s324_s24 = spop %323 }
 0x109   :  { %s100_s25 = sadd.f32 %s324_s24, %s322_s3 }
 0x10b   :  { %s116_s26 = smul.f32 32.0, %s100_s25 }
 0x113   :  { %s326_s27 = spop %325 }
 0x114   :  { %s129_s28 = smul.f32 2.0, %s326_s27 }
 0x116   :  { %s130_s29 = ssub.f32 %s116_s26, %s129_s28 }
 0x118   :  { %s131_s30 = smul.f32 0.00390625, %s130_s29 }
 0x11a   :  { %v132_v41 = vstv %s131_s30 }
 0x11b   :  { %343 = vrcp.f32 %v132_v41 }
 0x125   :  { %v344_v50 = vpop.eup %343 }
 0x126   :  { %327 = vpush %v344_v50 }
 0x127   :  { %329 = vpush %v202_v51 }
 0x128   :  { %331 = vpush %v213_v52 }
 0x129   :  { %333 = vpush %v242_v53 }
 0x157   :  { %s328_s5 = spop %327 }
 0x158   :  { %s330_s6 = spop %329  ;;  %s135_s13 = smul.f32 -0.5, %s328_s5 }
 0x159   :  { %s332_s7 = spop %331 }
 0x15a   :  { %s215_s8 = sadd.f32 %s332_s7, %s330_s6  ;;  %s334_s9 = spop %333 }
 0x15b   :  { %s244_s1 = smul.f32 2.0, %s334_s9 }
 0x15c   :  { %s231_s10 = smul.f32 32.0, %s215_s8 }
 0x15d   :  { %s138_s14 = smul.f32 0.5, %s135_s13 }
 0x15e   :  { %s245_s11 = ssub.f32 %s231_s10, %s244_s1 }
 0x15f   :  { %v139_v58 = vstv %s138_s14 }
 0x160   :  { %s246_s12 = smul.f32 0.00390625, %s245_s11  ;;  %v140_v60 = vmul.f32 %v139_v58, %v68_v57  ;;  %v141_v62 = vmul.f32 %v139_v58, %v71_v56  ;;  %v143_v63 = vmul.f32 %v139_v58, %v77_v59  ;;  %v142_v0 = vmul.f32 %v139_v58, %v74_v61 }
 0x162   :  { %v247_v54 = vstv %s246_s12  ;;  %v144_v1 = vmul.f32 1.442695, %v140_v60  ;;  %v146_v3 = vmul.f32 1.442695, %v141_v62  ;;  %v150_v4 = vmul.f32 1.442695, %v143_v63 }
 0x163   :  { %345 = vrcp.f32 %v247_v54  ;;  %v148_v5 = vmul.f32 1.442695, %v142_v0 }
 0x164   :  { %347 = vpow2.f32 %v144_v1 }
 0x165   :  { %349 = vpow2.f32 %v146_v3 }
 0x166   :  { %351 = vpow2.f32 %v150_v4 }
 0x167   :  { %353 = vpow2.f32 %v148_v5 }
 0x16d   :  { %v346_v55 = vpop.eup %345 }
 0x16e   :  { %335 = vpush %v346_v55  ;;  %v348_v11 = vpop.eup %347 }
 0x16f   :  { %v350_v12 = vpop.eup %349  ;;  %v152_v19 = vmul.f32 %v348_v11, %v348_v11 }
 0x170   :  { %v352_v14 = vpop.eup %351  ;;  %v153_v2 = vmul.f32 %v350_v12, %v350_v12 }
 0x171   :  { %v354_v7 = vpop.eup %353  ;;  %v155_v24 = vmul.f32 %v352_v14, %v352_v14  ;;  %v156_v26 = vmul.f32 %v152_v19, %v152_v19 }
 0x172   :  { %v154_v25 = vmul.f32 %v354_v7, %v354_v7  ;;  %v157_v27 = vmul.f32 %v153_v2, %v153_v2 }
 0x173   :  { %v159_v28 = vmul.f32 %v155_v24, %v155_v24  ;;  %v160_v30 = vadd.f32 %v156_v26, %v152_v19 }
 0x174   :  { %v158_v29 = vmul.f32 %v154_v25, %v154_v25  ;;  %v161_v31 = vadd.f32 %v157_v27, %v153_v2 }
 0x175   :  { %v163_v32 = vadd.f32 %v159_v28, %v155_v24  ;;  %v164_v34 = vadd.f32 %v348_v11, %v160_v30 }
 0x176   :  { %v162_v33 = vadd.f32 %v158_v29, %v154_v25  ;;  %v165_v36 = vadd.f32 %v350_v12, %v161_v31 }
 0x177   :  { %v167_v38 = vadd.f32 %v352_v14, %v163_v32 }
 0x178   :  { %v166_v41 = vadd.f32 %v354_v7, %v162_v33 }
 0x19f   :  { %s336_s15 = spop %335 }
 0x1a0   :  { %s250_s16 = smul.f32 -0.5, %s336_s15 }
 0x1a2   :  { %v251_v13 = vstv %s250_s16 }
 0x1a3   :  { %v252_v15 = vmul.f32 %v251_v13, %v183_v8  ;;  %v253_v16 = vmul.f32 %v251_v13, %v186_v6  ;;  %v255_v17 = vmul.f32 %v251_v13, %v192_v9  ;;  %v254_v18 = vmul.f32 %v251_v13, %v189_v10 }
 0x1a5   :  { %v256_v20 = vmul.f32 1.442695, %v252_v15  ;;  %v258_v21 = vmul.f32 1.442695, %v253_v16  ;;  %v262_v22 = vmul.f32 1.442695, %v255_v17 }
 0x1a6   :  { %v260_v23 = vmul.f32 1.442695, %v254_v18 }
 0x1a7   :  { %355 = vpow2.f32 %v256_v20 }
 0x1a8   :  { %357 = vpow2.f32 %v258_v21 }
 0x1a9   :  { %359 = vpow2.f32 %v262_v22 }
 0x1aa   :  { %361 = vpow2.f32 %v260_v23 }
 0x1b1   :  { %v356_v35 = vpop.eup %355 }
 0x1b2   :  { %v358_v37 = vpop.eup %357  ;;  %v264_v39 = vmul.f32 %v356_v35, %v164_v34 }
 0x1b3   :  { %v360_v40 = vpop.eup %359  ;;  %v265_v42 = vmul.f32 %v358_v37, %v165_v36 }
 0x1b4   :  { %v362_v43 = vpop.eup %361  ;;  %v267_v44 = vmul.f32 %v360_v40, %v167_v38  ;;  %v286_v45 = vsel %vm285_vm4, %v264_v39, 0.0 }
 0x1b5   :  { %v266_v46 = vmul.f32 %v362_v43, %v166_v41  ;;  %v287_v47 = vsel %vm285_vm4, %v265_v42, 0.0 }
 0x1b6   :  { %v288_v48 = vadd.f32 %v287_v47, %v286_v45  ;;  %v284_v50 = vmul.f32 -1.0, %v267_v44 }
 0x1b7   :  { %v283_v49 = vmul.f32 -1.0, %v266_v46 }
 0x1b8   :  { %v291_v53 = vsel %vm285_vm4, %v284_v50, 0.0 }
 0x1b9   :  { %v289_v51 = vsel %vm285_vm4, %v283_v49, 0.0 }
 0x1ba   :  { %v290_v52 = vadd.f32 %v289_v51, %v288_v48 }
 0x1bc   :  { %v292_v54 = vadd.f32 %v291_v53, %v290_v52 }
 0x1be   :  { %293 = vadd.xlane.f32.xlu0 %v292_v54 }
 0x24b   :  { %v294_v55 = vpop.xlane.xlu0 %293 }
 0x24c   :  { %v295_v56 = vrot.slane %v294_v55, 4 }
 0x24e   :  { %v296_v57 = vadd.f32 %v295_v56, %v294_v55 }
 0x250   :  { %v297_v58 = vrot.slane %v296_v57, 2 }
 0x252   :  { %v298_v59 = vadd.f32 %v297_v58, %v296_v57 }
 0x254   :  { %v299_v60 = vrot.slane %v298_v59, 1 }
 0x256   :  { %v300_v61 = vadd.f32 %v299_v60, %v298_v59 }
 0x258   :  { %337 = vpush %v300_v61 }
 0x289   :  { %s338_s17 = spop %337 }
 0x28a   :  { %s302_s19 = smul.f32 0.125, %s338_s17 }
 0x28c   :  { %s303_s20 = sadd.f32 0.2857143, %s302_s19 }
 0x28e   :  { %305 = sst [smem:[#allocation8]] %s303_s20 }
 0x28f   :  { %438 = shalt.err (!%p435_p12)
}
 0x290   :  { %s448_s24 = smov [#allocation8]  }
 0x291   :  { %313 = dma.smem_to_hbm %s448_s24, 16, %s573_s4, [#allocation4]  }
 0x292   :  { %443 = dma.done.wait [#allocation4], 16  }
 0x293   :  { %444 = vsyncadd [#allocation4], 4294967280 }
 0x294   :  { %317 = sfence }
 0x295   :  { %318 = vsyncpa [#allocation3], 1 }
 0x296   :  { %319 = vsyncpa [#allocation6], 1 }
 0x297   :  { %320 = vsyncpa [#allocation4], 1 }

</bundles_post_ra>
